<compile_context>
chip_gen: v5e
topology: v5e:2x2
jax: 0.10.0
libtpu: 0.0.40
codegen_flags: <defaults>
</compile_context>

<pallas_src>
import functools

import jax
import jax.numpy as jnp
from jax.experimental import pallas as pl
from jax.experimental.pallas import tpu as pltpu

LANE = 128
SUB = 8


def _multitask_loss_kernel(n_age, n_sex, tiles_per_core, tile_rows,
                           sigma_ref,
                           age_hat_ref, age_ref, sex_hat_ref, sex_ref,
                           out_ref,
                           acc_ref):
    i = pl.program_id(1)                       # reduction ("arbitrary") axis

    @pl.when(i == 0)
    def _init():
        acc_ref[...] = jnp.zeros_like(acc_ref)

    # Per-task scales folded into the accumulation: 0.5 / (n * sigma^2).
    s0 = sigma_ref[0].astype(jnp.float32)
    s1 = sigma_ref[1].astype(jnp.float32)
    c_age = 0.5 / (jnp.float32(n_age) * s0 * s0)
    c_sex = 0.5 / (jnp.float32(n_sex) * s1 * s1)

    # Global flat element index of every lane of this block (UNclamped), used
    # to mask ragged tails and clamped duplicate boundary blocks to exactly 0.
    # ~8 extra VPU ops/element, fully hidden under the HBM stream.
    blk = pl.program_id(0) * tiles_per_core + i
    base = blk * (tile_rows * LANE)
    row_ids = jax.lax.broadcasted_iota(jnp.int32, (tile_rows, LANE), 0)
    lane_ids = jax.lax.broadcasted_iota(jnp.int32, (tile_rows, LANE), 1)
    flat = base + row_ids * LANE + lane_ids

    # ---- MSE partial: (age_hat - age)^2 (pure VPU) ----
    diff = age_hat_ref[...].astype(jnp.float32) - age_ref[...].astype(jnp.float32)
    sq = jnp.where(flat < n_age, diff * diff, 0.0)

    # ---- BCEWithLogits partial (stable): max(x,0) - x*z + log1p(exp(-|x|)) ----
    x = sex_hat_ref[...].astype(jnp.float32)
    z = sex_ref[...].astype(jnp.float32)
    bce = jnp.maximum(x, 0.0) - x * z + jnp.log1p(jnp.exp(-jnp.abs(x)))
    bce = jnp.where(flat < n_sex, bce, 0.0)

    # Single merged accumulator (scales folded in).
    acc_ref[...] += sq * c_age + bce * c_sex

    # ---- epilogue: one cross-lane reduce per core, written to this core's block ----
    @pl.when(i == pl.num_programs(1) - 1)
    def _finalize():
        out_ref[...] = jnp.full(out_ref.shape, jnp.sum(acc_ref[...]), jnp.float32)


def _lane_view(x):
    """Flatten to a lane-dense (rows, 128) view.

    Free (no HBM copy) whenever size % 128 == 0; otherwise pads only up to the
    next 8x128 tile.  In-kernel masking makes the pad values irrelevant.
    """
    flat = jnp.ravel(x)
    n = flat.size
    if n % LANE == 0:
        return flat.reshape(n // LANE, LANE)
    padded = int(pl.cdiv(n, SUB * LANE)) * (SUB * LANE)
    flat = jnp.pad(flat, (0, padded - n))
    return flat.reshape(padded // LANE, LANE)


def multitask_loss(age_hat, sex_hat, age, sex, sigma, *, tile_rows=2048, n_split=2):
    """Pallas equivalent of MultiTaskLoss.forward. Returns a scalar f32."""
    n_age = int(age_hat.size)
    n_sex = int(sex_hat.size)

    ah2 = _lane_view(age_hat)
    a2 = _lane_view(age)
    sh2 = _lane_view(sex_hat)
    sx2 = _lane_view(sex)
    sigma_f32 = sigma.astype(jnp.float32)

    rows_max = max(ah2.shape[0], sh2.shape[0])

    # Tile rows: multiple of 8, no larger than the (rounded-up) data, and
    # capped so double-buffered inputs + f32 accumulator stay within ~12 MiB
    # (fits v5e's 16 MiB default scoped VMEM without touching vmem_limit_bytes).
    tb = min(int(pl.cdiv(tile_rows, SUB)) * SUB, int(pl.cdiv(rows_max, SUB)) * SUB)
    bytes_per_row = (sum(2 * LANE * t.dtype.itemsize for t in (ah2, a2, sh2, sx2))
                     + LANE * 4)
    vmem_budget = 12 * 1024 * 1024
    tb = min(tb, max(SUB, (vmem_budget // bytes_per_row) // SUB * SUB))
    tb = max(tb, SUB)

    n_blocks = int(pl.cdiv(rows_max, tb))
    n_split = max(1, min(int(n_split), n_blocks))      # split is a no-op when tiny
    tiles_per_core = int(pl.cdiv(n_blocks, n_split))

    def data_spec(arr):
        # Clamp the row-block index so a DMA never targets a fully
        # out-of-range block; clamped (duplicate) blocks are masked to zero in
        # the kernel via their UNclamped flat index.
        nb = max(1, int(pl.cdiv(arr.shape[0], tb)))
        return pl.BlockSpec(
            (tb, LANE),
            lambda c, i, _nb=nb: (jnp.minimum(c * tiles_per_core + i, _nb - 1), 0))

    kernel = functools.partial(_multitask_loss_kernel, n_age, n_sex,
                               tiles_per_core, tb)

    bytes_accessed = sum(int(t.size) * t.dtype.itemsize for t in (ah2, a2, sh2, sx2))
    cost = pl.CostEstimate(flops=12 * (n_age + n_sex),
                           transcendentals=2 * n_sex,
                           bytes_accessed=bytes_accessed)

    partials = pl.pallas_call(
        kernel,
        out_shape=jax.ShapeDtypeStruct((n_split, SUB, LANE), jnp.float32),
        grid_spec=pltpu.PrefetchScalarGridSpec(
            num_scalar_prefetch=0,
            grid=(n_split, tiles_per_core),
            in_specs=[
                pl.BlockSpec(memory_space=pltpu.MemorySpace.SMEM),   # sigma (2,)
                data_spec(ah2), data_spec(a2), data_spec(sh2), data_spec(sx2),
            ],
            # Per-core partial sum, one lane-dense (8,128) tile per core.
            out_specs=pl.BlockSpec((1, SUB, LANE), lambda c, i: (c, 0, 0)),
            scratch_shapes=[pltpu.VMEM((tb, LANE), jnp.float32)],    # merged accumulator
        ),
        compiler_params=pltpu.CompilerParams(
            dimension_semantics=("parallel", "arbitrary"),
        ),
        cost_estimate=cost,
    )(sigma_f32, ah2, a2, sh2, sx2)

    # Combine per-core partials + uncertainty regulariser (tiny scalar XLA ops).
    return partials[:, 0, 0].sum() + jnp.log(sigma_f32[0] * sigma_f32[1])


def multitask_loss_ref(age_hat, sex_hat, age, sex, sigma):
    """Pure-JAX reference (mirrors the PyTorch forward)."""
    ah = age_hat.astype(jnp.float32)
    a = age.astype(jnp.float32)
    x = sex_hat.astype(jnp.float32)
    z = sex.astype(jnp.float32)
    s = sigma.astype(jnp.float32)
    mse = jnp.mean((ah - a) ** 2)
    bce = jnp.mean(jnp.maximum(x, 0.0) - x * z + jnp.log1p(jnp.exp(-jnp.abs(x))))
    l = 0.5 * jnp.stack([mse, bce]) / s ** 2
    return l.sum() + jnp.log(jnp.prod(s))


if __name__ == "__main__":
    # Learnable parameter from __init__ (arbitrary positive values to exercise weighting).
    sigma = jnp.array([1.3, 0.7], jnp.float32)

    # Configs (batch, tile_rows) exercising:
    #   (2000, 8): non-lane-aligned batch -> minimal pad path, lane-tail mask,
    #              2 row-blocks split across the "parallel" axis.
    #   (2560, 8): lane-aligned -> zero-copy reshape, ragged last block (20 rows,
    #              tb=8) and a clamped duplicate boundary block on the 2nd core.
    #   (4096, 2048): zero-copy, default large tile, single block / no split.
    for idx, (batch, t_rows) in enumerate([(2000, 8), (2560, 8), (4096, 2048)]):
        key = jax.random.PRNGKey(0)
        k1, k2, k3, k4 = jax.random.split(key, 4)
        age_hat = jax.random.normal(k1, (batch,), jnp.float32)
        age = jax.random.normal(k2, (batch,), jnp.float32)
        sex_hat = jax.random.normal(k3, (batch,), jnp.float32)
        sex = (jax.random.uniform(k4, (batch,)) > 0.5).astype(jnp.float32)

        out = jax.block_until_ready(
            multitask_loss(age_hat, sex_hat, age, sex, sigma, tile_rows=t_rows))
        ref = multitask_loss_ref(age_hat, sex_hat, age, sex, sigma)
        assert jnp.allclose(out, ref, rtol=1e-5, atol=1e-5), (idx, out, ref)

    print("KERNEL_OK")
</pallas_src>

<mosaic_0001>
module attributes {stable_mosaic.version = 11 : i64} {
  func.func @_multitask_loss_kernel(%arg0: i32, %arg1: i32, %arg2: memref<2xf32, #tpu.memory_space<smem>>, %arg3: memref<8x128xf32, #tpu.memory_space<vmem>>, %arg4: memref<8x128xf32, #tpu.memory_space<vmem>>, %arg5: memref<8x128xf32, #tpu.memory_space<vmem>>, %arg6: memref<8x128xf32, #tpu.memory_space<vmem>>, %arg7: memref<1x8x128xf32, #tpu.memory_space<vmem>>, %arg8: memref<8x128xf32, #tpu.memory_space<vmem>>) attributes {dimension_semantics = [#tpu.dimension_semantics<parallel>, #tpu.dimension_semantics<arbitrary>], iteration_bounds = array<i64: 2, 1>, scalar_prefetch = 0 : i64, scratch_operands = 1 : i64, tpu.core_type = #tpu.core_type<tc>, window_params = [{transform_indices = @transform_0, window_bounds = array<i64: 2>}, {transform_indices = @transform_1, window_bounds = array<i64: 8, 128>}, {transform_indices = @transform_2, window_bounds = array<i64: 8, 128>}, {transform_indices = @transform_3, window_bounds = array<i64: 8, 128>}, {transform_indices = @transform_4, window_bounds = array<i64: 8, 128>}, {transform_indices = @transform_5, window_bounds = array<i64: 1, 8, 128>}]} {
    %c0_i32 = arith.constant 0 : i32
    %0 = arith.cmpi eq, %arg1, %c0_i32 : i32
    %1 = arith.extui %0 : i1 to i32
    %c0_i32_0 = arith.constant 0 : i32
    %2 = arith.cmpi ne, %1, %c0_i32_0 : i32
    scf.if %2 {
      %cst_23 = arith.constant 0.000000e+00 : f32
      %56 = vector.broadcast %cst_23 : f32 to vector<8x128xf32>
      %c0_24 = arith.constant 0 : index
      %c0_25 = arith.constant 0 : index
      %57 = vector.load %arg8[%c0_24, %c0_25] : memref<8x128xf32, #tpu.memory_space<vmem>>, vector<8x128xf32>
      tpu.vector_store %arg8[%c0_24, %c0_25], %56 {strides = array<i32>} : memref<8x128xf32, #tpu.memory_space<vmem>>, vector<8x128xf32>,
    } else {
    }
    %c0 = arith.constant 0 : index
    %3 = memref.load %arg2[%c0] : memref<2xf32, #tpu.memory_space<smem>>
    %c1 = arith.constant 1 : index
    %4 = memref.load %arg2[%c1] : memref<2xf32, #tpu.memory_space<smem>>
    %cst = arith.constant 2.000000e+03 : f32
    %5 = arith.mulf %cst, %3 : f32
    %6 = arith.mulf %5, %3 : f32
    %cst_1 = arith.constant 5.000000e-01 : f32
    %7 = arith.divf %cst_1, %6 : f32
    %cst_2 = arith.constant 2.000000e+03 : f32
    %8 = arith.mulf %cst_2, %4 : f32
    %9 = arith.mulf %8, %4 : f32
    %cst_3 = arith.constant 5.000000e-01 : f32
    %10 = arith.divf %cst_3, %9 : f32
    %c1_i32 = arith.constant 1 : i32
    %11 = arith.muli %arg0, %c1_i32 : i32
    %12 = arith.addi %11, %arg1 : i32
    %c1024_i32 = arith.constant 1024 : i32
    %13 = arith.muli %12, %c1024_i32 : i32
    %14 = tpu.iota {dimensions = array<i32: 0>} : vector<8x128xi32>
    %15 = tpu.iota {dimensions = array<i32: 1>} : vector<8x128xi32>
    %c128_i32 = arith.constant 128 : i32
    %16 = vector.broadcast %c128_i32 : i32 to vector<8x128xi32>
    %17 = arith.muli %14, %16 : vector<8x128xi32>
    %18 = vector.broadcast %13 : i32 to vector<8x128xi32>
    %19 = arith.addi %18, %17 : vector<8x128xi32>
    %20 = arith.addi %19, %15 : vector<8x128xi32>
    %c0_4 = arith.constant 0 : index
    %c0_5 = arith.constant 0 : index
    %21 = vector.load %arg3[%c0_4, %c0_5] : memref<8x128xf32, #tpu.memory_space<vmem>>, vector<8x128xf32>
    %c0_6 = arith.constant 0 : index
    %c0_7 = arith.constant 0 : index
    %22 = vector.load %arg4[%c0_6, %c0_7] : memref<8x128xf32, #tpu.memory_space<vmem>>, vector<8x128xf32>
    %23 = arith.subf %21, %22 : vector<8x128xf32>
    %c2000_i32 = arith.constant 2000 : i32
    %24 = vector.broadcast %c2000_i32 : i32 to vector<8x128xi32>
    %25 = arith.cmpi slt, %20, %24 : vector<8x128xi32>
    %26 = arith.mulf %23, %23 : vector<8x128xf32>
    %cst_8 = arith.constant 0.000000e+00 : f32
    %27 = vector.broadcast %cst_8 : f32 to vector<8x128xf32>
    %28 = arith.select %25, %26, %27 : vector<8x128xi1>, vector<8x128xf32>
    %c0_9 = arith.constant 0 : index
    %c0_10 = arith.constant 0 : index
    %29 = vector.load %arg5[%c0_9, %c0_10] : memref<8x128xf32, #tpu.memory_space<vmem>>, vector<8x128xf32>
    %c0_11 = arith.constant 0 : index
    %c0_12 = arith.constant 0 : index
    %30 = vector.load %arg6[%c0_11, %c0_12] : memref<8x128xf32, #tpu.memory_space<vmem>>, vector<8x128xf32>
    %cst_13 = arith.constant 0.000000e+00 : f32
    %31 = vector.broadcast %cst_13 : f32 to vector<8x128xf32>
    %32 = arith.maximumf %29, %31 : vector<8x128xf32>
    %33 = arith.mulf %29, %30 : vector<8x128xf32>
    %34 = arith.subf %32, %33 : vector<8x128xf32>
    %35 = math.absf %29 : vector<8x128xf32>
    %cst_14 = arith.constant 0.000000e+00 : f32
    %36 = vector.broadcast %cst_14 : f32 to vector<8x128xf32>
    %37 = arith.subf %36, %35 : vector<8x128xf32>
    %38 = math.exp %37 : vector<8x128xf32>
    %39 = math.log1p %38 : vector<8x128xf32>
    %40 = arith.addf %34, %39 : vector<8x128xf32>
    %c2000_i32_15 = arith.constant 2000 : i32
    %41 = vector.broadcast %c2000_i32_15 : i32 to vector<8x128xi32>
    %42 = arith.cmpi slt, %20, %41 : vector<8x128xi32>
    %cst_16 = arith.constant 0.000000e+00 : f32
    %43 = vector.broadcast %cst_16 : f32 to vector<8x128xf32>
    %44 = arith.select %42, %40, %43 : vector<8x128xi1>, vector<8x128xf32>
    %c0_17 = arith.constant 0 : index
    %c0_18 = arith.constant 0 : index
    %45 = vector.load %arg8[%c0_17, %c0_18] : memref<8x128xf32, #tpu.memory_space<vmem>>, vector<8x128xf32>
    %46 = vector.broadcast %7 : f32 to vector<8x128xf32>
    %47 = arith.mulf %28, %46 : vector<8x128xf32>
    %48 = vector.broadcast %10 : f32 to vector<8x128xf32>
    %49 = arith.mulf %44, %48 : vector<8x128xf32>
    %50 = arith.addf %47, %49 : vector<8x128xf32>
    %51 = arith.addf %45, %50 : vector<8x128xf32>
    %c0_19 = arith.constant 0 : index
    %c0_20 = arith.constant 0 : index
    %52 = vector.load %arg8[%c0_19, %c0_20] : memref<8x128xf32, #tpu.memory_space<vmem>>, vector<8x128xf32>
    tpu.vector_store %arg8[%c0_19, %c0_20], %51 {strides = array<i32>} : memref<8x128xf32, #tpu.memory_space<vmem>>, vector<8x128xf32>,
    %c0_i32_21 = arith.constant 0 : i32
    %53 = arith.cmpi eq, %arg1, %c0_i32_21 : i32
    %54 = arith.extui %53 : i1 to i32
    %c0_i32_22 = arith.constant 0 : i32
    %55 = arith.cmpi ne, %54, %c0_i32_22 : i32
    scf.if %55 {
      %c0_23 = arith.constant 0 : index
      %c0_24 = arith.constant 0 : index
      %56 = vector.load %arg8[%c0_23, %c0_24] : memref<8x128xf32, #tpu.memory_space<vmem>>, vector<8x128xf32>
      %57 = vector.shape_cast %56 : vector<8x128xf32> to vector<1x8x128xf32>
      %cst_25 = arith.constant dense<0.000000e+00> : vector<1xf32>
      %58 = vector.multi_reduction <add>, %57, %cst_25 [1, 2] : vector<1x8x128xf32> to vector<1xf32>
      %59 = vector.shape_cast %58 : vector<1xf32> to vector<1x1x1xf32>
      %60 = vector.extract %59[0, 0, 0] : f32 from vector<1x1x1xf32>
      %61 = vector.broadcast %60 : f32 to vector<1x8x128xf32>
      %c0_26 = arith.constant 0 : index
      %c0_27 = arith.constant 0 : index
      %c0_28 = arith.constant 0 : index
      %62 = vector.load %arg7[%c0_26, %c0_27, %c0_28] : memref<1x8x128xf32, #tpu.memory_space<vmem>>, vector<1x8x128xf32>
      tpu.vector_store %arg7[%c0_26, %c0_27, %c0_28], %61 {strides = array<i32>} : memref<1x8x128xf32, #tpu.memory_space<vmem>>, vector<1x8x128xf32>,
    } else {
    }
    return
  }
  func.func @transform_0(%arg0: i32, %arg1: i32) -> i32 {
    %c0_i32 = arith.constant 0 : i32
    %c0_i32_0 = arith.constant 0 : i32
    return %c0_i32 : i32
  }
  func.func @transform_1(%arg0: i32, %arg1: i32) -> (i32, i32) {
    %c1_i32 = arith.constant 1 : i32
    %0 = arith.muli %arg0, %c1_i32 : i32
    %1 = arith.addi %0, %arg1 : i32
    %c1_i32_0 = arith.constant 1 : i32
    %2 = arith.minsi %1, %c1_i32_0 : i32
    %c0_i32 = arith.constant 0 : i32
    %c0_i32_1 = arith.constant 0 : i32
    return %2, %c0_i32 : i32, i32
  }
  func.func @transform_2(%arg0: i32, %arg1: i32) -> (i32, i32) {
    %c1_i32 = arith.constant 1 : i32
    %0 = arith.muli %arg0, %c1_i32 : i32
    %1 = arith.addi %0, %arg1 : i32
    %c1_i32_0 = arith.constant 1 : i32
    %2 = arith.minsi %1, %c1_i32_0 : i32
    %c0_i32 = arith.constant 0 : i32
    %c0_i32_1 = arith.constant 0 : i32
    return %2, %c0_i32 : i32, i32
  }
  func.func @transform_3(%arg0: i32, %arg1: i32) -> (i32, i32) {
    %c1_i32 = arith.constant 1 : i32
    %0 = arith.muli %arg0, %c1_i32 : i32
    %1 = arith.addi %0, %arg1 : i32
    %c1_i32_0 = arith.constant 1 : i32
    %2 = arith.minsi %1, %c1_i32_0 : i32
    %c0_i32 = arith.constant 0 : i32
    %c0_i32_1 = arith.constant 0 : i32
    return %2, %c0_i32 : i32, i32
  }
  func.func @transform_4(%arg0: i32, %arg1: i32) -> (i32, i32) {
    %c1_i32 = arith.constant 1 : i32
    %0 = arith.muli %arg0, %c1_i32 : i32
    %1 = arith.addi %0, %arg1 : i32
    %c1_i32_0 = arith.constant 1 : i32
    %2 = arith.minsi %1, %c1_i32_0 : i32
    %c0_i32 = arith.constant 0 : i32
    %c0_i32_1 = arith.constant 0 : i32
    return %2, %c0_i32 : i32, i32
  }
  func.func @transform_5(%arg0: i32, %arg1: i32) -> (i32, i32, i32) {
    %c0_i32 = arith.constant 0 : i32
    %c0_i32_0 = arith.constant 0 : i32
    %c0_i32_1 = arith.constant 0 : i32
    return %arg0, %c0_i32, %c0_i32_0 : i32, i32, i32
  }
}

</mosaic_0001>

<bundles_post_ra>
// kernel: tpu_custom_call.1
= control target key start
LH: loop header
LB: loop body
LE: loop exit
PB: predicated region body
PF: predicated region fallthrough
CT: control target
= control target key end

     0   :  { %s1385_s0 = inlined_call_operand.hbm [shape: f32[2], index: 0, kind: input, shape index: {}]   ;;  %s1386_s1 = inlined_call_operand.hbm [shape: f32[16,128], index: 1, kind: input, shape index: {}]   ;;  %s1387_s2 = inlined_call_operand.hbm [shape: f32[16,128], index: 2, kind: input, shape index: {}]   ;;  %s1388_s3 = inlined_call_operand.hbm [shape: f32[16,128], index: 3, kind: input, shape index: {}]   ;;  %s1389_s4 = inlined_call_operand.hbm [shape: f32[16,128], index: 4, kind: input, shape index: {}]   ;;  %s1390_s5 = inlined_call_operand.hbm [shape: f32[2,8,128], index: 5, kind: output, shape index: {}]  }
   0x1   :  { %1398 = sst [smem:[#allocation27_spill]] %s1385_s0 }
   0x2   :  { %1399 = sst [smem:[#allocation28_spill]] %s1386_s1 }
   0x3   :  { %1400 = sst [smem:[#allocation29_spill]] %s1387_s2 }
   0x4   :  { %10 = vsyncpa [#allocation6], 0 }
   0x5   :  { %11 = vsyncpa [#allocation4], 0 }
   0x6   :  { %13 = vsyncpa [#allocation4 + $0x1], 0 }
   0x7   :  { %14 = vsyncpa [#allocation9], 0 }
   0x8   :  { %16 = vsyncpa [#allocation9 + $0x1], 0 }
   0x9   :  { %17 = vsyncpa [#allocation12], 0 }
   0xa   :  { %19 = vsyncpa [#allocation12 + $0x1], 0 }
   0xb   :  { %20 = vsyncpa [#allocation5], 0 }
   0xc   :  { %22 = vsyncpa [#allocation5 + $0x1], 0  ;;  %s1144_s18 = smov 0   ;;  %s1146_s19 = smov 0  }
   0xd   :  { %s1148_s20 = smov 0   ;;  %s1150_s21 = smov 0  }
   0xe   :  { %s1152_s22 = smov 0   ;;  %s1154_s23 = smov 0  }
   0xf   :  { %s1156_s24 = smov 0   ;;  %s1158_s25 = smov 0  }
  0x10   :  { %s1160_s26 = smov 0  }
  0x11 LB: > { %1401 = sst [smem:[#allocation19_spill]] %s1087_s20  ;;  %s40_s27 = sadd.s32 1, %s1107_s25  ;;  %s1111_s26 = sphi %s1160_s26, %s28_s26   ;;  %s1107_s25 = sphi %s1158_s25, %s1425_s25   ;;  %s1103_s24 = sphi %s1156_s24, %s1424_s24   ;;  %s1099_s23 = sphi %s1154_s23, %s1423_s23   ;;  %s1095_s22 = sphi %s1152_s22, %s1429_s22   ;;  %s1091_s21 = sphi %s1150_s21, %s1428_s21   ;;  %s1087_s20 = sphi %s1148_s20, %s1421_s20   ;;  %s1083_s19 = sphi %s1146_s19, %s1427_s19   ;;  %s1079_s18 = sphi %s1144_s18, %s1426_s18  }
  0x12   : > { %1402 = sst [smem:[#allocation20_spill]] %s1099_s23  ;;  %p66_p0 = scmp.lt.s32.totalorder %s1107_s25, 1 }
  0x13   : > { %1403 = sst [smem:[#allocation21_spill]] %s1107_s25  ;;  %p42_p1 = scmp.ge.s32.totalorder %s40_s27, 2 }
  0x14   : > { %1404 = sst [smem:[#allocation22_spill]] %s1111_s26  ;;  %s74_s28 = sadd.s32 1, %s1099_s23 }
  0x15   : > { %s67_s29 = scalar_select %p66_p0, %s1107_s25, 1 }
  0x16   : > { %s1431_s27 = smov (%p42_p1, %s40_s27), 0  ;;  %p81_p2 = scmp.ne.s32.totalorder %s1099_s23, %s1095_s22 }
  0x17   : > { %1405 = sst [smem:[#allocation23_spill]] %s1431_s27  ;;  %p82_p3 = scmp.eq.s32.totalorder %s1111_s26, 0 }
  0x18   : > { %p69_p4 = scmp.lt.s32.totalorder %s1431_s27, 1  ;;  %s193_s30 = ssub.s32 %s1107_s25, %s1431_s27 }
  0x19   : > { %p83_p5 = por %p82_p3, %p81_p2  ;;  %p1201_p6 = scmp.eq.s32.totalorder %s193_s30, 0 }
  0x1a   : > { %s70_s7 = scalar_select %p69_p4, %s1431_s27, 1 }
  0x1b   : > { %p710_p7 = scmp.ge.s32.totalorder %s1111_s26, 2  ;;  %p774_p8 = scmp.lt.s32.totalorder %s1111_s26, 2 }
  0x1c   : > { %s71_s8 = ssub.s32 %s67_s29, %s70_s7  ;;  %s1209_s9 = sand.u32 1, %s1099_s23  }
  0x1d   : > { %p72_p9 = scmp.eq.s32.totalorder %s71_s8, 0  ;;  %s1212_s10 = sshll.u32 %s1209_s9, 3 }
  0x1e   : > { %s1214_s11 = sshll.u32 %s67_s29, 3  ;;  %p1216_p10 = pnand %p774_p8, %p83_p5 }
  0x1f   : > { %s1221_s13 = scalar_select %p72_p9, %s1099_s23, %s74_s28  }
  0x20   : > { %s265_s14 = sand.u32 1, %s1111_s26   ;;  %s1409_s2 = sld [smem:[#allocation29_spill]] }
  0x21   : > { %1408 = sst [smem:[#allocation24_spill]] %s1221_s13  ;;  %s269_s29 = scalar_lea.vmem [#allocation8], %s1212_s10 }
  0x22   : > { %s280_s30 = sshll.u32 %s269_s29, 4  ;;  %s1229_s8 = scalar_lea.sflag [#allocation9], %s265_s14  ;;  %s281_s30 = int_to_ptr.vmem [resolvable:$true] %s280_s30 }
  0x23   : > { %s1235_s28 = sadd.s32 4294967295, %s1111_s26   ;;  %s707_s15 = sadd.s32 4294967294, %s1111_s26  }
  0x24   : > { %p87_p11 = scmp.ne.s32.totalorder %s1095_s22, %s1091_s21  ;;  %p88_p12 = scmp.eq.s32.totalorder %s1235_s28, 0 }
  0x25   : > { %s196_s16 = sadd.s32 1, %s1087_s20  ;;  %p206_p0 = scmp.ne.s32.totalorder %s1087_s20, %s1083_s19 }
  0x26   : > { %s276_s17 = scalar_lea.hbm %s1409_s2, %s1214_s11  ;;  %p1249_p13 = por %p88_p12, %p87_p11 }
  0x27   : > { %s278_s7 = sshll.u32 %s276_s17, 4  ;;  %p207_p1 = scmp.eq.s32.totalorder %s1235_s28, 1  ;;  %s279_s7 = int_to_ptr.hbm [resolvable:$true] %s278_s7 }
  0x28   : > { %762 = dma.hbm_to_vmem [thread:$0]  (!%p1216_p10), %s279_s7, 128, %s281_s30, %s1229_s8  }
  0x29   : > { %s1245_s17 = scalar_select %p1201_p6, %s1087_s20, %s196_s16  }
  0x2a   : > { %p212_p2 = scmp.ne.s32.totalorder %s1083_s19, %s1079_s18  ;;  %p213_p3 = scmp.eq.s32.totalorder %s707_s15, 1 }
  0x2b   : > { %1410 = sst [smem:[#allocation25_spill]] %s1245_s17  ;;  %p708_p4 = scmp.ge.s32.totalorder %s1111_s26, 1 }
  0x2c   : > { %p1259_p5 = por %p207_p1, %p206_p0  ;;  %p220_p8 = scmp.lt.s32.totalorder %s1111_s26, 3 }
  0x2d   : > { %p1264_p6 = por %p213_p3, %p212_p2  ;;  %s1416_s0 = sld [smem:[#allocation27_spill]] }
  0x2e   : > { %p1268_p9 = pnand %p708_p4, %p220_p8  ;;  %s1417_s1 = sld [smem:[#allocation28_spill]] }
  0x2f   : > { %s1413_s6 = scalar_select %p1264_p6, 1, 0 }
  0x30   : > { %p752_p11 = pneg %p1268_p9  ;;  %s247_s13 = scalar_lea.vmem [#allocation7], %s1212_s10 }
  0x31   : > { %1414 = sst [smem:[#allocation26_spill]] %s1413_s6  ;;  %s258_s30 = sshll.u32 %s247_s13, 4  ;;  %s259_s30 = int_to_ptr.vmem [resolvable:$true] %s258_s30 }
  0x32   : > { %p753_p0 = pnand %p752_p11, %p88_p12  ;;  %s1113_s7 = smov [#allocation3]  }
  0x33   : > { %s232_s15 = sshll.u32 %s1416_s0, 4  ;;  %s244_s0 = scalar_lea.sflag [#allocation4], %s1209_s9  ;;  %s233_s15 = int_to_ptr.hbm [resolvable:$true] %s232_s15 }
  0x34   : > { %s254_s27 = scalar_lea.hbm %s1417_s1, %s1214_s11  ;;  %s298_s1 = scalar_lea.hbm %s1388_s3, %s1214_s11 }
  0x35   : > { %s256_s25 = sshll.u32 %s254_s27, 4  ;;  %s300_s23 = sshll.u32 %s298_s1, 4  ;;  %s257_s25 = int_to_ptr.hbm [resolvable:$true] %s256_s25  ;;  %s301_s23 = int_to_ptr.hbm [resolvable:$true] %s300_s23 }
  0x36   : > { %755 = dma.hbm_to_smem (!%p753_p0), %s233_s15, 16, %s1113_s7, [#allocation6]  }
  0x37   : > { %759 = dma.hbm_to_vmem [thread:$0]  (!%p1216_p10), %s257_s25, 128, %s259_s30, %s244_s0  }
  0x38   : > { %s291_s17 = scalar_lea.vmem [#allocation10], %s1212_s10  ;;  %s320_s15 = scalar_lea.hbm %s1389_s4, %s1214_s11 }
  0x39   : > { %s302_s27 = sshll.u32 %s291_s17, 4  ;;  %s313_s7 = scalar_lea.vmem [#allocation11], %s1212_s10  ;;  %s303_s27 = int_to_ptr.vmem [resolvable:$true] %s302_s27 }
  0x3a   : > { %765 = dma.hbm_to_vmem [thread:$0]  (!%p1216_p10), %s301_s23, 128, %s303_s27, %s1229_s8  }
  0x3b   : > { %s324_s26 = sshll.u32 %s313_s7, 4  ;;  %s322_s6 = sshll.u32 %s320_s15, 4  ;;  %s325_s26 = int_to_ptr.vmem [resolvable:$true] %s324_s26  ;;  %s323_s6 = int_to_ptr.hbm [resolvable:$true] %s322_s6 }
  0x3c   : > { %s310_s0 = scalar_lea.sflag [#allocation12], %s1209_s9  ;;  %333 = sbr.rel (%p1268_p9) target bundleno = 346 (0x15a), region = 40 }
  0x3d   : > { %768 = dma.hbm_to_vmem [thread:$0]  (!%p1216_p10), %s323_s6, 128, %s325_s26, %s310_s0  }
  0x41   : > { %1058 = dma.done.wait (%p88_p12), [#allocation6], 16  }
  0x42   : > { %1060 = vsyncadd (%p88_p12), [#allocation6], 4294967280  ;;  %s340_s1 = sand.u32 1, %s1095_s22  }
  0x43   : > { %s1310_s20 = sshll.u32 %s340_s1, 3  ;;  %s341_s23 = scalar_lea.sflag [#allocation4], %s340_s1 }
  0x44   : > { %s344_s25 = scalar_lea.vmem [#allocation7], %s1310_s20 }
  0x45   : > { %1062 = dma.done.wait (%p1249_p13), %s341_s23, 128  }
  0x46   : > { %1064 = vsyncadd (%p1249_p13), %s341_s23, 4294967168  ;;  %s350_s26 = sand.u32 1, %s1235_s28   ;;  %s354_s10 = scalar_lea.vmem [#allocation8], %s1310_s20 }
  0x47   : > { %s351_s9 = scalar_lea.sflag [#allocation9], %s350_s26 }
  0x48   : > { %1066 = dma.done.wait (%p1249_p13), %s351_s9, 256  }
  0x49   : > { %1068 = vsyncadd (%p1249_p13), %s351_s9, 4294967040  ;;  %s364_s11 = scalar_lea.vmem [#allocation10], %s1310_s20  ;;  %s371_s12 = scalar_lea.sflag [#allocation12], %s340_s1 }
  0x4a   : > { %s374_s8 = scalar_lea.vmem [#allocation11], %s1310_s20 }
  0x4b   : > { %1070 = dma.done.wait (%p1249_p13), %s371_s12, 128  }
  0x4c   : > { %1072 = vsyncadd (%p1249_p13), %s371_s12, 4294967168 }
  0x4d   : > { %380 = sfence }
  0x4e   : > { %s435_s28 = sld [smem:[#allocation3]]  ;;  %v491_v22 = vld [vmem:[%s364_s11] sm:$0xff]  ;;  %v477_v27 = vlaneseq  ;;  %s727_s14 = sshll.u32 %s1103_s24, 10  ;;  %v492_v33 = vld [vmem:[%s374_s8] sm:$0xff] }
  0x4f   : > { %s726_s17 = sld [smem:[#allocation3 + $0x1]]  ;;  %v496_v23 = vand.u32 2147483647, %v491_v22  ;;  %v482_v32 = vstv %s727_s14  ;;  %v485_v39 = vld [vmem:[%s344_s25] sm:$0xff]  ;;  %v486_v40 = vld [vmem:[%s354_s10] sm:$0xff]  ;;  %v493_v41 = vmax.f32 %v491_v22, 0.0  ;;  %v494_v42 = vmul.f32 %v492_v33, %v491_v22 }
  0x50   : > { %v478_v29 = vshrl.u32 %v477_v27, 7  ;;  %v480_v37 = vand.u32 127, %v477_v27  ;;  %v487_v45 = vsub.f32 %v485_v39, %v486_v40  ;;  %s415_s7 = sand.u32 1, %s1083_s19   ;;  %s729_s1 = sshll.u32 %s1103_s24, 3 }
  0x51   : > { %v497_v24 = vsub.f32 0.0, %v496_v23  ;;  %v495_v47 = vsub.f32 %v493_v41, %v494_v42  ;;  %s725_s0 = sshll.u32 %s415_s7, 3  ;;  %s545_s25 = scalar_lea.hbm %s1390_s5, %s729_s1 }
  0x52   : > { %v481_v31 = vmul.u32 128, %v478_v29  ;;  %v489_v49 = vmul.f32 %v487_v45, %v487_v45  ;;  %s417_s26 = scalar_lea.vmem [#allocation13], %s725_s0  ;;  %s549_s10 = sshll.u32 %s545_s25, 4  ;;  %s550_s10 = int_to_ptr.hbm [resolvable:$true] %s549_s10 }
  0x53   : > { %v498_v25 = vmul.f32 1.442695, %v497_v24  ;;  %s547_s9 = sshll.u32 %s417_s26, 4  ;;  %s535_s12 = scalar_lea.sflag [#allocation5], %s415_s7  ;;  %s548_s9 = int_to_ptr.vmem [resolvable:$true] %s547_s9 }
  0x54   : > { %s437_s6 = smul.f32 2000.0, %s435_s28  ;;  %v483_v38 = vadd.s32 %v482_v32, %v481_v31  ;;  %s1007_s8 = sshra.s32 %s550_s10, 4  ;;  %s1008_s8 = int_to_ptr.hbm [resolvable:$true] %s1007_s8 }
  0x55   : > { %s456_s29 = smul.f32 2000.0, %s726_s17  ;;  %p1014_p1 = scmp.lt.s32.totalorder %s1008_s8, %s1390_s5 }
  0x56   : > { %s438_s30 = smul.f32 %s437_s6, %s435_s28  ;;  %v484_v46 = vadd.s32 %v483_v38, %v480_v37  ;;  %s1009_s28 = scalar_lea.hbm %s1008_s8, 8 }
  0x57   : > { %s457_s2 = smul.f32 %s726_s17, %s456_s29  ;;  %p1010_p10 = scmp.ne.s32.totalorder %s1008_s8, %s1009_s28 }
  0x58   : > { %v439_v0 = vstv %s438_s30  ;;  %vm488_vm9 = vcmp.lt.s32.totalorder %v484_v46, 2000  ;;  %s1013_s6 = scalar_lea.hbm %s1390_s5, 16 }
  0x59   : > { %850 = vrcp.f32 %v439_v0  ;;  %v458_v1 = vstv %s457_s2  ;;  %vm445_vm0 = vweird.f32 %v439_v0  ;;  %v451_v5 = vand.u32 2147483648, %v439_v0  ;;  %p1011_p12 = pnand %p1010_p10, %p1259_p5  ;;  %p1015_p2 = scmp.lt.s32.totalorder %s1013_s6, %s1009_s28 }
  0x5a   : > { %852 = vrcp.f32 %v458_v1  ;;  %v449_v7 = vand.u32 2147483647, %v439_v0  ;;  %vm464_vm2 = vweird.f32 %v458_v1  ;;  %v470_v9 = vand.u32 2147483648, %v458_v1 }
  0x5b   : > { %v468_v12 = vand.u32 2147483647, %v458_v1  ;;  %v452_v13 = vor.u32 1.1754944e-38, %v451_v5  ;;  %854 = vpow2.f32 %v498_v25  ;;  %v490_v51 = vsel %vm488_vm9, %v489_v49, 0.0  ;;  %p1012_p13 = pneg %p1011_p12  ;;  %p1016_p3 = por %p1015_p2, %p1014_p1 }
  0x5c   : > { %vm450_vm5 = vcmp.eq.f32.partialorder %v449_v7, 8.507059e+37  ;;  %v471_v16 = vor.u32 1.1754944e-38, %v470_v9 }
  0x5d   : > { %vm469_vm7 = vcmp.eq.f32.partialorder %v468_v12, 8.507059e+37  ;;  %p1017_p4 = pnand %p1016_p3, %p1012_p13 }
  0x5f   : > { %v851_v2 = vpop.eup %850 }
  0x60   : > { %v441_v3 = vmul.f32 %v851_v2, %v439_v0  ;;  %v853_v4 = vpop.eup %852  ;;  %vm446_vm1 = vweird.f32 %v851_v2 }
  0x61   : > { %v460_v8 = vmul.f32 %v853_v4, %v458_v1  ;;  %vm465_vm3 = vweird.f32 %v853_v4  ;;  %vm447_vm4 = vmor %vm445_vm0, %vm446_vm1  ;;  %v855_v26 = vpop.eup %854 }
  0x62   : > { %v442_v6 = vsub.f32 1.0, %v441_v3  ;;  %vm466_vm6 = vmor %vm464_vm2, %vm465_vm3  ;;  %v500_v28 = vadd.f32 1.0, %v855_v26  ;;  %v503_v30 = vmul.f32 -0.5, %v855_v26  ;;  %v506_v36 = vand.u32 2147483647, %v855_v26 }
  0x63   : > { %v461_v11 = vsub.f32 1.0, %v460_v8 }
  0x64   : > { %v443_v10 = vmul.f32 %v851_v2, %v442_v6  ;;  %856 = vlog2.f32 %v500_v28  ;;  %v504_v34 = vadd.f32 1.0, %v503_v30  ;;  %vm507_vm8 = vcmp.lt.f32.partialorder %v506_v36, 0.0004427343 }
  0x65   : > { %v462_v15 = vmul.f32 %v853_v4, %v461_v11 }
  0x66   : > { %v444_v14 = vadd.f32 %v851_v2, %v443_v10  ;;  %v505_v44 = vmul.f32 %v855_v26, %v504_v34 }
  0x67   : > { %v463_v18 = vadd.f32 %v853_v4, %v462_v15 }
  0x68   : > { %v448_v17 = vsel %vm447_vm4, %v851_v2, %v444_v14 }
  0x69   : > { %v453_v19 = vsel %vm450_vm5, %v452_v13, %v448_v17  ;;  %v467_v20 = vsel %vm466_vm6, %v853_v4, %v463_v18 }
  0x6a   : > { %732 = vpush %v453_v19  ;;  %v472_v21 = vsel %vm469_vm7, %v471_v16, %v467_v20  ;;  %v857_v35 = vpop.eup %856 }
  0x6b   : > { %734 = vpush %v472_v21  ;;  %v502_v43 = vmul.f32 0.6931472, %v857_v35 }
  0x6d   : > { %v508_v48 = vsel %vm507_vm8, %v505_v44, %v502_v43 }
  0x6e   : > { %v509_v50 = vadd.f32 %v508_v48, %v495_v47 }
  0x70   : > { %v510_v53 = vsel %vm488_vm9, %v509_v50, 0.0 }
  0x9b   : > { %s733_s16 = spop %732 }
  0x9c   : > { %s455_s27 = smul.f32 0.5, %s733_s16  ;;  %s735_s13 = spop %734 }
  0x9d   : > { %s474_s15 = smul.f32 0.5, %s735_s13 }
  0x9e   : > { %v512_v52 = vstv %s455_s27 }
  0x9f   : > { %v513_v54 = vmul.f32 %v512_v52, %v490_v51  ;;  %v514_v55 = vstv %s474_s15 }
  0xa0   : > { %v515_v56 = vmul.f32 %v514_v55, %v510_v53 }
  0xa2   : > { %v516_v57 = vadd.f32 %v515_v56, %v513_v54 }
  0xa4   : > { %523 = vadd.xlane.f32.xlu0 %v516_v57 }
 0x117   : > { %v524_v58 = vpop.xlane.xlu0 %523 }
 0x118   : > { %v525_v59 = vrot.slane %v524_v58, 4 }
 0x11a   : > { %v526_v60 = vadd.f32 %v525_v59, %v524_v58 }
 0x11c   : > { %v527_v61 = vrot.slane %v526_v60, 2 }
 0x11e   : > { %v528_v62 = vadd.f32 %v527_v61, %v526_v60 }
 0x120   : > { %v529_v63 = vrot.slane %v528_v62, 1 }
 0x122   : > { %v530_v0 = vadd.f32 %v529_v63, %v528_v62 }
 0x124   : > { %736 = vpush %v530_v0 }
 0x155   : > { %s737_s11 = spop %736 }
 0x156   : > { %v532_v1 = vstv %s737_s11 }
 0x157   : > { %533 = vst [vmem:[%s417_s26] sm:$0xff] %v532_v1 }
 0x158   : > { %1020 = shalt.err (!%p1017_p4)
}
 0x159   : > { %750 = dma.vmem_to_hbm [thread:$0]  (%p1259_p5), %s548_s9, 128, %s550_s10, %s535_s12  }
 0x15a PF: > { %s1419_s14 = sld [smem:[#allocation22_spill]]  ;;  %s561_s16 = sand.u32 1, %s1079_s18  }
 0x15b   : > { %p770_p8 = pnand %p710_p7, %p1264_p6  ;;  %s562_s27 = scalar_lea.sflag [#allocation5], %s561_s16 }
 0x15d   : > { %p771_p9 = pneg %p770_p8 }
 0x15f   : > { %1074 = dma.done.wait (%p771_p9), %s562_s27, 128  }
 0x160   : > { %1076 = vsyncadd (%p771_p9), %s562_s27, 4294967168  ;;  %s28_s26 = sadd.s32 1, %s1419_s14   ;;  %s1420_s13 = sld [smem:[#allocation19_spill]] }
 0x161   : > { %p25_p11 = scmp.ge.s32.totalorder %s28_s26, 4   ;;  %s1421_s20 = sld [smem:[#allocation25_spill]] }
 0x162   : > { %s1422_s15 = sld [smem:[#allocation20_spill]]  ;;  %s1426_s18 = smov %s1083_s19 }
 0x163   : > { %s1423_s23 = sld [smem:[#allocation24_spill]]  ;;  %s1428_s21 = smov %s1095_s22 }
 0x164   : > { %s1424_s24 = sld [smem:[#allocation21_spill]]  ;;  %27 = sbr.rel (!%p25_p11) target bundleno = 17 (0x11), region = 135 }
 0x165   : > { %s1425_s25 = sld [smem:[#allocation23_spill]] }
 0x166   : > { %s1427_s19 = smov %s1420_s13 }
 0x168   : > { %s1429_s22 = smov %s1422_s15 }
 0x169   :  { %568 = vsyncpa [#allocation4], 1 }
 0x16a   :  { %570 = vsyncpa [#allocation4 + $0x1], 1 }
 0x16b   :  { %571 = vsyncpa [#allocation9], 1 }
 0x16c   :  { %573 = vsyncpa [#allocation9 + $0x1], 1 }
 0x16d   :  { %574 = vsyncpa [#allocation12], 1 }
 0x16e   :  { %576 = vsyncpa [#allocation12 + $0x1], 1 }
 0x16f   :  { %577 = vsyncpa [#allocation5], 1 }
 0x170   :  { %579 = vsyncpa [#allocation5 + $0x1], 1 }
 0x171   :  { %580 = vsyncpa [#allocation6], 1 }
 0x172   :  { %582 = vsyncpa [#allocation6 + $0x1], 1 }

</bundles_post_ra>
